<compile_context>
chip_gen: v7x
topology: tpu7x:2x2x1
jax: 0.10.0
libtpu: 0.0.40
codegen_flags: <defaults>
</compile_context>

<pallas_src>
import math

import jax
import jax.numpy as jnp
from jax.experimental import pallas as pl
from jax.experimental.pallas import tpu as pltpu


def _round_up(x, m):
    return ((x + m - 1) // m) * m


def _pick_batch_tile(B, max_tile=512):
    """Largest multiple-of-8 divisor of B (<= max_tile) that keeps >= 8 grid
    steps for pipelining; fall back to >= 2 steps (v7x megacore), then B."""
    if B % 8 != 0:
        return B
    best_8 = best_2 = None
    t = 8
    while t <= min(B, max_tile):
        if B % t == 0:
            if B // t >= 8:
                best_8 = t
            if B // t >= 2:
                best_2 = t
        t += 8
    if best_8 is not None:
        return best_8
    if best_2 is not None:
        return best_2
    return B


def _encoder_kernel(w_ref, w1_ref, b1_ref, w2_ref, b2_ref, w3_ref, b3_ref,
                    z_ref):
    # Layer 1: bf16 operands on the MXU, f32 accumulation; bias/ReLU in f32.
    h = jnp.dot(w_ref[...], w1_ref[...], preferred_element_type=jnp.float32)
    h = jnp.maximum(h + b1_ref[...], 0.0)
    # Layer 2
    h = jnp.dot(h.astype(w2_ref.dtype), w2_ref[...],
                preferred_element_type=jnp.float32)
    h = jnp.maximum(h + b2_ref[...], 0.0)
    # Layer 3
    h = jnp.dot(h.astype(w3_ref.dtype), w3_ref[...],
                preferred_element_type=jnp.float32)
    z_ref[...] = jnp.maximum(h + b3_ref[...], 0.0).astype(z_ref.dtype)


def encoder_forward(w, params, *, batch_tile=None, compute_dtype=jnp.bfloat16):
    """Fused 3-layer MLP encoder (matmul + bias + relu) in one Pallas kernel."""
    (w1, b1), (w2, b2), (w3, b3) = params
    B, in_size = w.shape
    h1, h2, latent = w1.shape[1], w2.shape[1], w3.shape[1]

    # The (dead) reshape in the PyTorch forward requires this to be valid:
    assert (B * in_size) % 9 == 0, "w.reshape([B, -1, 9]) would fail"

    if batch_tile is None:
        batch_tile = _pick_batch_tile(B)
    assert B % batch_tile == 0, "batch_tile must divide batch"
    grid = (B // batch_tile,)

    # Pad feature dims to 128-lane multiples; zero padding keeps numerics exact.
    h1p = _round_up(h1, 128)
    h2p = _round_up(h2, 128)
    lzp = _round_up(latent, 128)

    cd = compute_dtype
    x = w.astype(cd)
    # NOTE: in real use pre-pad/cast the weights once outside the forward.
    w1p = jnp.zeros((in_size, h1p), cd).at[:, :h1].set(w1.astype(cd))
    w2p = jnp.zeros((h1p, h2p), cd).at[:h1, :h2].set(w2.astype(cd))
    w3p = jnp.zeros((h2p, lzp), cd).at[:h2, :latent].set(w3.astype(cd))
    b1p = jnp.zeros((1, h1p), jnp.float32).at[:, :h1].set(b1.astype(jnp.float32))
    b2p = jnp.zeros((1, h2p), jnp.float32).at[:, :h2].set(b2.astype(jnp.float32))
    b3p = jnp.zeros((1, lzp), jnp.float32).at[:, :latent].set(b3.astype(jnp.float32))

    # VMEM budget: double-buffered in/out tiles + (conservatively) double-
    # buffered resident weights + f32 intermediates; clamp to [32, 64] MiB so
    # the limit is valid on v7x as well as v5e/v6e.
    # TODO(synk): for very large in_size add a K-reduction grid axis on layer 1
    # instead of relying on the whole w1 fitting in VMEM.
    cd_bytes = jnp.dtype(cd).itemsize
    est = (2 * batch_tile * in_size * cd_bytes
           + 2 * batch_tile * lzp * 4
           + 2 * (in_size * h1p + h1p * h2p + h2p * lzp) * cd_bytes
           + 2 * (h1p + h2p + lzp) * 4
           + batch_tile * (h1p + h2p + lzp) * 4)
    vmem_limit = int(min(max(32 << 20, 2 * est), 64 << 20))

    out_padded = pl.pallas_call(
        _encoder_kernel,
        out_shape=jax.ShapeDtypeStruct((B, lzp), w.dtype),
        grid_spec=pltpu.PrefetchScalarGridSpec(
            num_scalar_prefetch=0,
            grid=grid,
            in_specs=[
                pl.BlockSpec((batch_tile, in_size), lambda i: (i, 0)),
                pl.BlockSpec((in_size, h1p), lambda i: (0, 0)),
                pl.BlockSpec((1, h1p), lambda i: (0, 0)),
                pl.BlockSpec((h1p, h2p), lambda i: (0, 0)),
                pl.BlockSpec((1, h2p), lambda i: (0, 0)),
                pl.BlockSpec((h2p, lzp), lambda i: (0, 0)),
                pl.BlockSpec((1, lzp), lambda i: (0, 0)),
            ],
            out_specs=pl.BlockSpec((batch_tile, lzp), lambda i: (i, 0)),
        ),
        compiler_params=pltpu.CompilerParams(
            dimension_semantics=("parallel",),
            vmem_limit_bytes=vmem_limit),
    )(x, w1p, b1p, w2p, b2p, w3p, b3p)

    # Slice the zero-padded latent columns back off.
    return out_padded[:, :latent]


def init_encoder_params(key, in_size, latent_size, dtype=jnp.float32):
    """Deterministic init mirroring nn.Linear's U(-1/sqrt(fan_in), 1/sqrt(fan_in)).
    Weights stored [in_features, out_features] (transposed vs torch)."""
    h1 = in_size // 2
    h2 = in_size // 4
    sizes = [(in_size, h1), (h1, h2), (h2, latent_size)]
    params = []
    for fan_in, fan_out in sizes:
        key, kw, kb = jax.random.split(key, 3)
        bound = 1.0 / math.sqrt(fan_in)
        W = jax.random.uniform(kw, (fan_in, fan_out), dtype, -bound, bound)
        b = jax.random.uniform(kb, (fan_out,), dtype, -bound, bound)
        params.append((W, b))
    return params


def encoder_ref_f32(w, params):
    """Pure f32 JAX reference (matches the PyTorch module numerically)."""
    (w1, b1), (w2, b2), (w3, b3) = params
    h = jnp.maximum(w @ w1 + b1, 0.0)
    h = jnp.maximum(h @ w2 + b2, 0.0)
    return jnp.maximum(h @ w3 + b3, 0.0)


def encoder_ref_mixed(w, params, compute_dtype=jnp.bfloat16):
    """Mirrors the kernel's bf16-operand / f32-accumulate arithmetic."""
    (w1, b1), (w2, b2), (w3, b3) = params
    cd = compute_dtype
    h = jnp.dot(w.astype(cd), w1.astype(cd), preferred_element_type=jnp.float32)
    h = jnp.maximum(h + b1, 0.0)
    h = jnp.dot(h.astype(cd), w2.astype(cd), preferred_element_type=jnp.float32)
    h = jnp.maximum(h + b2, 0.0)
    h = jnp.dot(h.astype(cd), w3.astype(cd), preferred_element_type=jnp.float32)
    return jnp.maximum(h + b3, 0.0)


if __name__ == "__main__":
    # Small shapes consistent with the module: in_size divisible by 4 (for the
    # /2, /4 hidden sizes) and B*in_size divisible by 9 (for the dead reshape).
    # B=64 with the auto-picked batch_tile=8 gives an 8-step pipelined grid.
    B = 64
    in_size = 36          # -> hidden sizes 18 and 9
    latent_size = 8

    key = jax.random.PRNGKey(0)
    kx, kp = jax.random.split(key)
    w = jax.random.normal(kx, (B, in_size), jnp.float32)
    params = init_encoder_params(kp, in_size, latent_size)

    z = encoder_forward(w, params)
    z = jax.block_until_ready(z)
    assert z.shape == (B, latent_size)

    z_mixed = encoder_ref_mixed(w, params)   # same bf16/f32 mixed precision
    z_f32 = encoder_ref_f32(w, params)       # full f32 (torch-equivalent)
    assert jnp.allclose(z, z_mixed, atol=1e-3, rtol=1e-3), \
        "mismatch vs mixed-precision reference"
    assert jnp.allclose(z, z_f32, atol=5e-2, rtol=5e-2), \
        "mismatch vs f32 reference"

    print("KERNEL_OK")
</pallas_src>

<mosaic_0001>
module attributes {stable_mosaic.version = 11 : i64} {
  func.func @_encoder_kernel(%arg0: i32, %arg1: memref<8x36xbf16, #tpu.memory_space<vmem>>, %arg2: memref<36x128xbf16, #tpu.memory_space<vmem>>, %arg3: memref<1x128xf32, #tpu.memory_space<vmem>>, %arg4: memref<128x128xbf16, #tpu.memory_space<vmem>>, %arg5: memref<1x128xf32, #tpu.memory_space<vmem>>, %arg6: memref<128x128xbf16, #tpu.memory_space<vmem>>, %arg7: memref<1x128xf32, #tpu.memory_space<vmem>>, %arg8: memref<8x128xf32, #tpu.memory_space<vmem>>) attributes {dimension_semantics = [#tpu.dimension_semantics<parallel>], iteration_bounds = array<i64: 8>, scalar_prefetch = 0 : i64, scratch_operands = 0 : i64, tpu.core_type = #tpu.core_type<tc>, window_params = [{transform_indices = @transform_0, window_bounds = array<i64: 8, 36>}, {pipeline_mode = #tpu.pipeline_mode<synchronous>, transform_indices = @transform_1, window_bounds = array<i64: 36, 128>}, {pipeline_mode = #tpu.pipeline_mode<synchronous>, transform_indices = @transform_2, window_bounds = array<i64: 1, 128>}, {pipeline_mode = #tpu.pipeline_mode<synchronous>, transform_indices = @transform_3, window_bounds = array<i64: 128, 128>}, {pipeline_mode = #tpu.pipeline_mode<synchronous>, transform_indices = @transform_4, window_bounds = array<i64: 1, 128>}, {pipeline_mode = #tpu.pipeline_mode<synchronous>, transform_indices = @transform_5, window_bounds = array<i64: 128, 128>}, {pipeline_mode = #tpu.pipeline_mode<synchronous>, transform_indices = @transform_6, window_bounds = array<i64: 1, 128>}, {transform_indices = @transform_7, window_bounds = array<i64: 8, 128>}]} {
    %c0 = arith.constant 0 : index
    %c0_0 = arith.constant 0 : index
    %0 = vector.load %arg1[%c0, %c0_0] : memref<8x36xbf16, #tpu.memory_space<vmem>>, vector<8x36xbf16>
    %c0_1 = arith.constant 0 : index
    %c0_2 = arith.constant 0 : index
    %1 = vector.load %arg2[%c0_1, %c0_2] : memref<36x128xbf16, #tpu.memory_space<vmem>>, vector<36x128xbf16>
    %cst = arith.constant dense<0.000000e+00> : vector<8x128xf32>
    %2 = tpu.matmul %0, %1, %cst {dimension_numbers = #tpu.dot_dimension_numbers<[1], [0], [0], [1], [0, 0, 1, 1], [], []>} : vector<8x36xbf16>, vector<36x128xbf16>, vector<8x128xf32> -> vector<8x128xf32>
    %c0_3 = arith.constant 0 : index
    %c0_4 = arith.constant 0 : index
    %3 = vector.load %arg3[%c0_3, %c0_4] : memref<1x128xf32, #tpu.memory_space<vmem>>, vector<1x128xf32>
    %4 = vector.broadcast %3 : vector<1x128xf32> to vector<8x128xf32>
    %5 = arith.addf %2, %4 : vector<8x128xf32>
    %cst_5 = arith.constant 0.000000e+00 : f32
    %6 = vector.broadcast %cst_5 : f32 to vector<8x128xf32>
    %7 = arith.maximumf %5, %6 : vector<8x128xf32>
    %8 = arith.truncf %7 : vector<8x128xf32> to vector<8x128xbf16>
    %c0_6 = arith.constant 0 : index
    %c0_7 = arith.constant 0 : index
    %9 = vector.load %arg4[%c0_6, %c0_7] : memref<128x128xbf16, #tpu.memory_space<vmem>>, vector<128x128xbf16>
    %cst_8 = arith.constant dense<0.000000e+00> : vector<8x128xf32>
    %10 = tpu.matmul %8, %9, %cst_8 {dimension_numbers = #tpu.dot_dimension_numbers<[1], [0], [0], [1], [0, 0, 1, 1], [], []>} : vector<8x128xbf16>, vector<128x128xbf16>, vector<8x128xf32> -> vector<8x128xf32>
    %c0_9 = arith.constant 0 : index
    %c0_10 = arith.constant 0 : index
    %11 = vector.load %arg5[%c0_9, %c0_10] : memref<1x128xf32, #tpu.memory_space<vmem>>, vector<1x128xf32>
    %12 = vector.broadcast %11 : vector<1x128xf32> to vector<8x128xf32>
    %13 = arith.addf %10, %12 : vector<8x128xf32>
    %cst_11 = arith.constant 0.000000e+00 : f32
    %14 = vector.broadcast %cst_11 : f32 to vector<8x128xf32>
    %15 = arith.maximumf %13, %14 : vector<8x128xf32>
    %16 = arith.truncf %15 : vector<8x128xf32> to vector<8x128xbf16>
    %c0_12 = arith.constant 0 : index
    %c0_13 = arith.constant 0 : index
    %17 = vector.load %arg6[%c0_12, %c0_13] : memref<128x128xbf16, #tpu.memory_space<vmem>>, vector<128x128xbf16>
    %cst_14 = arith.constant dense<0.000000e+00> : vector<8x128xf32>
    %18 = tpu.matmul %16, %17, %cst_14 {dimension_numbers = #tpu.dot_dimension_numbers<[1], [0], [0], [1], [0, 0, 1, 1], [], []>} : vector<8x128xbf16>, vector<128x128xbf16>, vector<8x128xf32> -> vector<8x128xf32>
    %c0_15 = arith.constant 0 : index
    %c0_16 = arith.constant 0 : index
    %19 = vector.load %arg7[%c0_15, %c0_16] : memref<1x128xf32, #tpu.memory_space<vmem>>, vector<1x128xf32>
    %20 = vector.broadcast %19 : vector<1x128xf32> to vector<8x128xf32>
    %21 = arith.addf %18, %20 : vector<8x128xf32>
    %cst_17 = arith.constant 0.000000e+00 : f32
    %22 = vector.broadcast %cst_17 : f32 to vector<8x128xf32>
    %23 = arith.maximumf %21, %22 : vector<8x128xf32>
    %c0_18 = arith.constant 0 : index
    %c0_19 = arith.constant 0 : index
    %24 = vector.load %arg8[%c0_18, %c0_19] : memref<8x128xf32, #tpu.memory_space<vmem>>, vector<8x128xf32>
    tpu.vector_store %arg8[%c0_18, %c0_19], %23 {strides = array<i32>} : memref<8x128xf32, #tpu.memory_space<vmem>>, vector<8x128xf32>,
    return
  }
  func.func @transform_0(%arg0: i32) -> (i32, i32) {
    %c0_i32 = arith.constant 0 : i32
    %c0_i32_0 = arith.constant 0 : i32
    return %arg0, %c0_i32 : i32, i32
  }
  func.func @transform_1(%arg0: i32) -> (i32, i32) {
    %c0_i32 = arith.constant 0 : i32
    %c0_i32_0 = arith.constant 0 : i32
    %c0_i32_1 = arith.constant 0 : i32
    return %c0_i32, %c0_i32_0 : i32, i32
  }
  func.func @transform_2(%arg0: i32) -> (i32, i32) {
    %c0_i32 = arith.constant 0 : i32
    %c0_i32_0 = arith.constant 0 : i32
    %c0_i32_1 = arith.constant 0 : i32
    return %c0_i32, %c0_i32_0 : i32, i32
  }
  func.func @transform_3(%arg0: i32) -> (i32, i32) {
    %c0_i32 = arith.constant 0 : i32
    %c0_i32_0 = arith.constant 0 : i32
    %c0_i32_1 = arith.constant 0 : i32
    return %c0_i32, %c0_i32_0 : i32, i32
  }
  func.func @transform_4(%arg0: i32) -> (i32, i32) {
    %c0_i32 = arith.constant 0 : i32
    %c0_i32_0 = arith.constant 0 : i32
    %c0_i32_1 = arith.constant 0 : i32
    return %c0_i32, %c0_i32_0 : i32, i32
  }
  func.func @transform_5(%arg0: i32) -> (i32, i32) {
    %c0_i32 = arith.constant 0 : i32
    %c0_i32_0 = arith.constant 0 : i32
    %c0_i32_1 = arith.constant 0 : i32
    return %c0_i32, %c0_i32_0 : i32, i32
  }
  func.func @transform_6(%arg0: i32) -> (i32, i32) {
    %c0_i32 = arith.constant 0 : i32
    %c0_i32_0 = arith.constant 0 : i32
    %c0_i32_1 = arith.constant 0 : i32
    return %c0_i32, %c0_i32_0 : i32, i32
  }
  func.func @transform_7(%arg0: i32) -> (i32, i32) {
    %c0_i32 = arith.constant 0 : i32
    %c0_i32_0 = arith.constant 0 : i32
    return %arg0, %c0_i32 : i32, i32
  }
}

</mosaic_0001>

<bundles_post_ra>
// kernel: tpu_custom_call.1
= control target key start
LH: loop header
LB: loop body
LE: loop exit
PB: predicated region body
PF: predicated region fallthrough
CT: control target
= control target key end

     0   :  { %12 = vsyncpa [#allocation3], 0  ;;  %s1301_s0 = inlined_call_operand.vmem [shape: bf16[64,36], index: 0, kind: input, shape index: {}]   ;;  %s1302_s1 = inlined_call_operand.hbm [shape: bf16[36,128], index: 1, kind: input, shape index: {}]   ;;  %s1303_s2 = inlined_call_operand.vmem [shape: f32[1,128], index: 2, kind: input, shape index: {}]   ;;  %s1304_s3 = inlined_call_operand.hbm [shape: bf16[128,128], index: 3, kind: input, shape index: {}]   ;;  %s1305_s4 = inlined_call_operand.vmem [shape: f32[1,128], index: 4, kind: input, shape index: {}]   ;;  %s1306_s5 = inlined_call_operand.vmem [shape: bf16[128,128], index: 5, kind: input, shape index: {}]   ;;  %s1307_s6 = inlined_call_operand.vmem [shape: f32[1,128], index: 6, kind: input, shape index: {}]   ;;  %s1308_s7 = inlined_call_operand.hbm [shape: f32[64,128], index: 7, kind: output, shape index: {}]  }
   0x1   :  { %13 = vsyncpa [#allocation6], 0 }
   0x2   :  { %14 = vsyncpa [#allocation4], 0 }
   0x3   :  { %16 = vsyncpa [#allocation4 + $0x1], 0  ;;  %s1071_s24 = smov 0   ;;  %s1073_s25 = smov 0  }
   0x4   :  { %s1075_s26 = smov 0   ;;  %s1077_s27 = smov 0  }
   0x5 LB: > { %s1092_s28 = sadd.s32 4294967295, %s1022_s27   ;;  %s704_s29 = sadd.s32 4294967294, %s1022_s27   ;;  %s1022_s27 = sphi %s1077_s27, %s1328_s27   ;;  %s1018_s26 = sphi %s1075_s26, %s1327_s26   ;;  %s1014_s25 = sphi %s1073_s25, %s1326_s25   ;;  %s1010_s24 = sphi %s1071_s24, %s1325_s24  }
   0x6   : > { %s1096_s30 = sadd.s32 1, %s1022_s27   ;;  %s181_s8 = sadd.s32 1, %s1018_s26 }
   0x7   : > { %s178_s9 = ssub.s32 %s1022_s27, %s1096_s30  ;;  %p191_p0 = scmp.ne.s32.totalorder %s1018_s26, %s1014_s25 }
   0x8   : > { %p179_p1 = scmp.eq.s32.totalorder %s178_s9, 0  ;;  %p192_p2 = scmp.eq.s32.totalorder %s1092_s28, 7 }
   0x9   : > { %p197_p3 = scmp.ne.s32.totalorder %s1014_s25, %s1010_s24  ;;  %p198_p4 = scmp.eq.s32.totalorder %s704_s29, 7 }
   0xa   : > { %s1107_s10 = scalar_select %p179_p1, %s1018_s26, %s181_s8  }
   0xb   : > { %p1109_p5 = por %p192_p2, %p191_p0  ;;  %p1113_p6 = por %p198_p4, %p197_p3 }
   0xc   : > { %1312 = sst [smem:[#allocation11_spill]] %s1107_s10  ;;  %p705_p7 = scmp.ge.s32.totalorder %s1022_s27, 1 }
   0xd   : > { %s1313_s11 = scalar_select %p1109_p5, 1, 0 }
   0xe   : > { %s1314_s12 = scalar_select %p1113_p6, 1, 0 }
   0xf   : > { %p205_p8 = scmp.lt.s32.totalorder %s1022_s27, 9  ;;  %p1309_p9 = scmp.eq.s32.totalorder %s1092_s28, 0 }
  0x10   : > { %s1024_s14 = smov [#allocation2]   ;;  %s1025_s17 = smov [#allocation5]  }
  0x11   : > { %p1120_p10 = pnand %p705_p7, %p205_p8  ;;  %s217_s15 = sshll.u32 %s1024_s14, 4  ;;  %s218_s15 = int_to_ptr.vmem [resolvable:$true] %s217_s15 }
  0x12   : > { %s233_s18 = sshll.u32 %s1025_s17, 4  ;;  %s896_s21 = scalar_lea.hbm %s1302_s1, 320  ;;  %s1132_s18 = int_to_ptr.vmem [resolvable:$true] %s233_s18 }
  0x13   : > { %s1315_s13 = scalar_select %p1120_p10, 1, 0 }
  0x14   : > { %p823_p11 = pneg %p1120_p10  ;;  %p897_p13 = scmp.ne.s32.totalorder %s1302_s1, %s896_s21 }
  0x15   : > { %p903_p3 = scmp.lt.u32.totalorder %s896_s21, %s1302_s1 }
  0x16   : > { %p1128_p12 = pnand %p1309_p9, %p823_p11 }
  0x18   : > { %p898_p0 = pneg %p1128_p12 }
  0x1a   : > { %p899_p1 = pnand %p898_p0, %p897_p13 }
  0x1c   : > { %p900_p2 = pneg %p899_p1 }
  0x1e   : > { %p905_p4 = pnand %p903_p3, %p900_p2 }
  0x20   : > { %908 = shalt.err (!%p905_p4)
}
  0x21   : > { %s909_s9 = scalar_lea.vmem %s218_s15, 320  ;;  %p917_p9 = scmp.lt.s32.totalorder %s218_s15, %s218_s15 }
  0x22   : > { %p910_p7 = scmp.ne.s32.totalorder %s218_s15, %s909_s9  ;;  %p918_p6 = scmp.lt.s32.totalorder %s909_s9, %s909_s9 }
  0x24   : > { %p912_p8 = pnand %p910_p7, %p898_p0  ;;  %p919_p5 = por %p918_p6, %p917_p9 }
  0x26   : > { %p913_p11 = pneg %p912_p8 }
  0x28   : > { %p920_p10 = pnand %p919_p5, %p913_p11 }
  0x2a   : > { %923 = shalt.err (!%p920_p10)
}
  0x2b   : > { %s1026_s14 = smov 64   ;;  %s1027_s17 = smov 4  }
  0x2c   : > { %826 = dma.hbm_to_vmem [thread:$0]  (!%p1128_p12), %s1302_s1, 320, %s218_s15, [#allocation3], %s1026_s14, %s1026_s14, %s1027_s17  }
  0x2d   : > { %s924_s23 = scalar_lea.hbm %s1304_s3, 1024 }
  0x2e   : > { %p925_p13 = scmp.ne.s32.totalorder %s1304_s3, %s924_s23  ;;  %p931_p9 = scmp.lt.u32.totalorder %s924_s23, %s1304_s3 }
  0x30   : > { %p927_p5 = pnand %p925_p13, %p898_p0 }
  0x32   : > { %p928_p6 = pneg %p927_p5 }
  0x34   : > { %p933_p10 = pnand %p931_p9, %p928_p6 }
  0x36   : > { %936 = shalt.err (!%p933_p10)
}
  0x37   : > { %s937_s15 = scalar_lea.vmem %s1132_s18, 1024  ;;  %p945_p4 = scmp.lt.s32.totalorder %s1132_s18, %s1132_s18 }
  0x38   : > { %p938_p1 = scmp.ne.s32.totalorder %s1132_s18, %s937_s15  ;;  %p946_p7 = scmp.lt.s32.totalorder %s937_s15, %s937_s15 }
  0x3a   : > { %p940_p2 = pnand %p938_p1, %p898_p0  ;;  %p947_p8 = por %p946_p7, %p945_p4 }
  0x3c   : > { %p941_p3 = pneg %p940_p2 }
  0x3e   : > { %p948_p11 = pnand %p947_p8, %p941_p3 }
  0x40   : > { %951 = shalt.err (!%p948_p11)
}
  0x41   : > { %829 = dma.hbm_to_vmem [thread:$0]  (!%p1128_p12), %s1304_s3, 1024, %s1132_s18, [#allocation6], %s1026_s14, %s1026_s14, %s1027_s17  }
  0x42   : > { %p1317_p13 = scmp.ne.s32.totalorder %s1315_s13, 0 }
  0x43   : > { %p1318_p5 = scmp.eq.s32.totalorder (!%p1317_p13), %s1092_s28, 0 }
  0x44   : > { %265 = sbr.rel (%p1317_p13) target bundleno = 760 (0x2f8), region = 48 }
  0x4b   : > { %997 = dma.done.wait (%p1318_p5), [#allocation3], 320   ;;  %p1319_p0 = pmov %p1318_p5 }
  0x4d   : > { %999 = vsyncadd (%p1319_p0), [#allocation3], 4294966976  ;;  %p1320_p6 = pmov %p1319_p0 }
  0x4e   : > { %p1321_p9 = pmov %p1319_p0 }
  0x4f   : > { %1001 = dma.done.wait (%p1320_p6), [#allocation6], 1024  }
  0x50   : > { %1003 = vsyncadd (%p1321_p9), [#allocation6], 4294966272  ;;  %v1028_v0 = vmov 0.0   ;;  %vm1029_vm0 = vmmov 0   ;;  %p300_p12 = scmp.lt.s32.totalorder %s1092_s28, 7  ;;  %v877_v1 = vld [vmem:[#allocation2] sm:$0xff]  }
  0x51   : > { %763 = vmatprep.subr.bf16.mxu0 %v1028_v0  ;;  %769 = vmatprep.mubr.msk.bf16.mxu0 %vm1029_vm0, %v1028_v0  ;;  %v878_v2 = vld [vmem:[#allocation2 + $0x8] sm:$0xff]   ;;  %v879_v3 = vld [vmem:[#allocation2 + $0x10] ss:$0 sps:$4 sm:$0x33]   ;;  %v880_v4 = vld [vmem:[#allocation5] sm:$0xff]   ;;  %vm337_vm1 = vcmask 1041408  }
  0x52   : > { %773 = vmatprep.subr.bf16.mxu1 %v1028_v0  ;;  %789 = vmatprep.mubr.msk.bf16.mxu1 %vm1029_vm0, %v1028_v0  ;;  %s301_s13 = scalar_select %p300_p12, %s1092_s28, 7  ;;  %v881_v5 = vld [vmem:[#allocation5 + $0x8] sm:$0xff]   ;;  %v339_v6 = vsel %vm337_vm1, %v879_v3, 0  ;;  %vm333_vm2 = vcmask 293888   ;;  %v882_v7 = vld [vmem:[#allocation5 + $0x10] sm:$0xff]   ;;  %v883_v9 = vld [vmem:[#allocation5 + $0x18] sm:$0xff]  }
  0x53   : > { %764 = vmatpush3.bf16.msra.mxu0 %v877_v1  ;;  %774 = vmatpush3.bf16.msra.mxu1 %v880_v4  ;;  %v884_v10 = vld [vmem:[#allocation5 + $0x20] sm:$0xff]   ;;  %v885_v11 = vld [vmem:[#allocation5 + $0x28] sm:$0xff]   ;;  %v886_v12 = vld [vmem:[#allocation5 + $0x30] sm:$0xff]   ;;  %s297_s8 = sand.u32 1, %s1014_s25   ;;  %s738_s19 = sshll.u32 %s1092_s28, 7 }
  0x54   : > { %765 = vmatprep.subr.bf16.mxu0 %v1028_v0  ;;  %s713_s16 = sshll.u32 %s301_s13, 2  ;;  %775 = vmatprep.subr.bf16.mxu1 %v1028_v0  ;;  %v887_v13 = vld [vmem:[#allocation5 + $0x38] sm:$0xff]   ;;  %v888_v14 = vld [vmem:[%s1306_s5] sm:$0xff]   ;;  %v891_v17 = vld [vmem:[%s1306_s5 + $0x18] sm:$0xff]   ;;  %s712_s9 = sshll.u32 %s297_s8, 3 }
  0x55   : > { %s303_s17 = scalar_lea.vmem %s1301_s0, %s713_s16  ;;  %v889_v15 = vld [vmem:[%s1306_s5 + $0x8] sm:$0xff]   ;;  %v890_v16 = vld [vmem:[%s1306_s5 + $0x10] sm:$0xff]   ;;  %v892_v18 = vld [vmem:[%s1306_s5 + $0x20] sm:$0xff]   ;;  %s299_s13 = scalar_lea.vmem [#allocation7], %s712_s9 }
  0x56   : > { %v305_v8 = vld [vmem:[%s303_s17] sm:$0xf]  ;;  %v893_v19 = vld [vmem:[%s1306_s5 + $0x28] sm:$0xff]   ;;  %v894_v28 = vld [vmem:[%s1306_s5 + $0x30] sm:$0xff]   ;;  %s623_s16 = sshll.u32 %s299_s13, 4  ;;  %s1259_s17 = scalar_lea.hbm %s1308_s7, %s738_s19  ;;  %s1261_s16 = int_to_ptr.vmem [resolvable:$true] %s623_s16 }
  0x57   : > { %766 = vmatpush3.bf16.msra.mxu0 %v878_v2  ;;  %776 = vmatpush3.bf16.msra.mxu1 %v881_v5  ;;  %v714_v20 = vld [vmem:[%s1303_s2] ss:$0 sm:$0xff]  ;;  %v895_v29 = vld [vmem:[%s1306_s5 + $0x38] sm:$0xff]   ;;  %s610_s20 = scalar_lea.sflag [#allocation4], %s297_s8  ;;  %s952_s28 = scalar_lea.vmem %s1261_s16, 128 }
  0x58   : > { %767 = vmatprep.subr.bf16.mxu0 %v1028_v0  ;;  %777 = vmatprep.subr.bf16.mxu1 %v1028_v0  ;;  %v719_v30 = vld [vmem:[%s1305_s4] ss:$0 sm:$0xff]  ;;  %p953_p10 = scmp.ne.s32.totalorder %s1261_s16, %s952_s28  ;;  %p1322_p1 = scmp.ne.s32.totalorder %s1313_s11, 0 }
  0x59   : > { %v728_v38 = vld [vmem:[%s1307_s6] ss:$0 sm:$0xff]  ;;  %s1030_s21 = smov [#allocation7]  }
  0x5a   : > { %p954_p2 = pnand %p953_p10, %p1322_p1  ;;  %s956_s22 = sshll.u32 %s1030_s21, 4  ;;  %s957_s22 = int_to_ptr.vmem [resolvable:$false] %s956_s22 }
  0x5b   : > { %768 = vmatpush3.bf16.msra.mxu0 %v339_v6  ;;  %778 = vmatpush3.bf16.msra.mxu1 %v882_v7  ;;  %s958_s23 = scalar_lea.vmem %s957_s22, 256  ;;  %p959_p4 = scmp.lt.s32.totalorder %s1261_s16, %s957_s22 }
  0x5c   : > { %793 = vmatprep.subr.bf16.mxu0 %v1028_v0  ;;  %779 = vmatprep.subr.bf16.mxu1 %v1028_v0  ;;  %p955_p3 = pneg %p954_p2  ;;  %p960_p7 = scmp.lt.s32.totalorder %s958_s23, %s952_s28 }
  0x5e   : > { %770 = vmatmul.mubr.msk.bf16.vlgmr.msra.gmra.mrb[0].mxu0 %vm333_vm2, %v305_v8  ;;  %p961_p8 = por %p960_p7, %p959_p4 }
  0x5f   : > { %809 = vmatprep.mubr.msk.bf16.mxu0 %vm1029_vm0, %v1028_v0  ;;  %780 = vmatpush3.bf16.msra.mxu1 %v883_v9 }
  0x60   : > { %781 = vmatprep.subr.bf16.mxu1 %v1028_v0  ;;  %794 = vmatpush3.bf16.msra.mxu0 %v888_v14  ;;  %p962_p11 = pnand %p961_p8, %p955_p3 }
  0x61   : > { %795 = vmatprep.subr.bf16.mxu0 %v1028_v0 }
  0x63   : > { %782 = vmatpush3.bf16.msra.mxu1 %v884_v10 }
  0x64   : > { %783 = vmatprep.subr.bf16.mxu1 %v1028_v0  ;;  %796 = vmatpush3.bf16.msra.mxu0 %v889_v15 }
  0x65   : > { %797 = vmatprep.subr.bf16.mxu0 %v1028_v0 }
  0x67   : > { %784 = vmatpush3.bf16.msra.mxu1 %v885_v11 }
  0x68   : > { %785 = vmatprep.subr.bf16.mxu1 %v1028_v0  ;;  %798 = vmatpush3.bf16.msra.mxu0 %v890_v16 }
  0x69   : > { %799 = vmatprep.subr.bf16.mxu0 %v1028_v0 }
  0x6b   : > { %786 = vmatpush3.bf16.msra.mxu1 %v886_v12 }
  0x6c   : > { %787 = vmatprep.subr.bf16.mxu1 %v1028_v0  ;;  %800 = vmatpush3.bf16.msra.mxu0 %v891_v17 }
  0x6d   : > { %801 = vmatprep.subr.bf16.mxu0 %v1028_v0 }
  0x6f   : > { %788 = vmatpush3.bf16.msra.mxu1 %v887_v13 }
  0x70   : > { %802 = vmatpush3.bf16.msra.mxu0 %v892_v18 }
  0x71   : > { %803 = vmatprep.subr.bf16.mxu0 %v1028_v0 }
  0x74   : > { %804 = vmatpush3.bf16.msra.mxu0 %v893_v19 }
  0x75   : > { %805 = vmatprep.subr.bf16.mxu0 %v1028_v0 }
  0x78   : > { %806 = vmatpush3.bf16.msra.mxu0 %v894_v28 }
  0x79   : > { %807 = vmatprep.subr.bf16.mxu0 %v1028_v0 }
  0x7c   : > { %808 = vmatpush3.bf16.msra.mxu0 %v895_v29 }
 0x131   : > { %v375_v21 = vpop.f32.mrb[0].mxu0 }
 0x132   : > { %v376_v22 = vadd.f32 %v714_v20, %v375_v21  ;;  %v771_v23 = vpop.f32.mrb[1].mxu0 }
 0x133   : > { %v378_v24 = vpop.f32.mrb[2].mxu0 }
 0x134   : > { %v381_v25 = vmax.f32 %v376_v22, 0.0  ;;  %v772_v26 = vpop.f32.mrb[3].mxu0 }
 0x136   : > { %v382_v27 = vpack.c.bf16 %v381_v25, %v381_v25 }
 0x138   : > { %790 = vmatmul.mubr.bf16.vlgmr.msra.gmra.mrb[0].mxu1 %v382_v27 }
 0x20b   : > { %v488_v31 = vpop.f32.mrb[0].mxu1 }
 0x20c   : > { %v489_v32 = vadd.f32 %v719_v30, %v488_v31  ;;  %v791_v33 = vpop.f32.mrb[1].mxu1 }
 0x20d   : > { %v491_v34 = vpop.f32.mrb[2].mxu1 }
 0x20e   : > { %v494_v35 = vmax.f32 %v489_v32, 0.0  ;;  %v792_v36 = vpop.f32.mrb[3].mxu1 }
 0x210   : > { %v495_v37 = vpack.c.bf16 %v494_v35, %v494_v35 }
 0x212   : > { %810 = vmatmul.mubr.bf16.vlgmr.msra.gmra.mrb[4].mxu0 %v495_v37 }
 0x2e5   : > { %v601_v39 = vpop.f32.mrb[4].mxu0 }
 0x2e6   : > { %v602_v40 = vadd.f32 %v728_v38, %v601_v39  ;;  %v811_v41 = vpop.f32.mrb[5].mxu0 }
 0x2e7   : > { %v604_v42 = vpop.f32.mrb[6].mxu0 }
 0x2e8   : > { %v607_v43 = vmax.f32 %v602_v40, 0.0  ;;  %v812_v44 = vpop.f32.mrb[7].mxu0 }
 0x2ea   : > { %608 = vst [vmem:[%s299_s13] sm:$0xff] %v607_v43 }
 0x2eb   : > { %965 = shalt.err (!%p962_p11)
}
 0x2ec   : > { %s966_s29 = scalar_lea.hbm %s1259_s17, 128  ;;  %s970_s15 = scalar_lea.hbm %s1308_s7, 1024 }
 0x2ed   : > { %p967_p13 = scmp.ne.s32.totalorder %s1259_s17, %s966_s29  ;;  %p971_p6 = scmp.lt.u32.totalorder %s1259_s17, %s1308_s7 }
 0x2ee   : > { %p972_p9 = scmp.lt.u32.totalorder %s970_s15, %s966_s29  ;;  %p974_p10 = scmp.lt.u32.totalorder %s966_s29, %s1259_s17 }
 0x2ef   : > { %p968_p5 = pnand %p967_p13, %p1322_p1 }
 0x2f0   : > { %p973_p12 = por %p972_p9, %p971_p6 }
 0x2f1   : > { %p969_p0 = pneg %p968_p5 }
 0x2f2   : > { %p975_p2 = por %p974_p10, %p973_p12 }
 0x2f4   : > { %p976_p3 = pnand %p975_p2, %p969_p0 }
 0x2f6   : > { %979 = shalt.err (!%p976_p3)
}
 0x2f7   : > { %821 = dma.vmem_to_hbm [thread:$0]  (%p1322_p1), %s1261_s16, 128, %s1259_s17, %s610_s20  }
 0x2f8 PF: > { %p838_p4 = scmp.ge.s32.totalorder %s1022_s27, 2  ;;  %s635_s13 = sand.u32 1, %s1010_s24  }
 0x2f9   : > { %p1323_p7 = scmp.ne.s32.totalorder %s1314_s12, 0  ;;  %s636_s18 = scalar_lea.sflag [#allocation4], %s635_s13 }
 0x2fb   : > { %p831_p8 = pnand %p838_p4, %p1323_p7 }
 0x2fd   : > { %1005 = dma.done.wait (!%p831_p8), %s636_s18, 128  }
 0x2fe   : > { %1007 = vsyncadd (!%p831_p8), %s636_s18, 4294967168  ;;  %s1324_s14 = sld [smem:[#allocation11_spill]]  ;;  %p19_p11 = scmp.ge.s32.totalorder %s1096_s30, 10  }
 0x2ff   : > { %s1325_s24 = smov %s1014_s25  ;;  %s1326_s25 = smov %s1018_s26 }
 0x300   : > { %s1328_s27 = smov %s1096_s30  ;;  %21 = sbr.rel (!%p19_p11) target bundleno = 5 (0x5), region = 92 }
 0x304   : > { %s1327_s26 = smov %s1324_s14 }
 0x307   :  { %641 = vsyncpa [#allocation3], 1 }
 0x308   :  { %643 = vsyncpa [#allocation3 + $0x1], 1 }
 0x309   :  { %644 = vsyncpa [#allocation6], 1 }
 0x30a   :  { %645 = vsyncpa [#allocation4], 1 }
 0x30b   :  { %647 = vsyncpa [#allocation4 + $0x1], 1 }

</bundles_post_ra>
